<compile_context>
chip_gen: v7x
topology: tpu7x:2x2x1
jax: 0.10.0
libtpu: 0.0.40
codegen_flags: <defaults>
</compile_context>

<pallas_src>
import jax
import jax.numpy as jnp
from jax.experimental import pallas as pl
from jax.experimental.pallas import tpu as pltpu


# ---------------------------------------------------------------------------
# Pallas kernel: per-row scaling of the interleaved (re, im) rfft2 spectrum.
# Rows = (batch, channel) pairs on the sublane axis; interleaved spectral
# samples on the lane axis.  The scale is real, so interleaving is irrelevant.
# ---------------------------------------------------------------------------
def _scale_kernel_tiled(spec_ref, w_ref, out_ref):
    # w_ref is the per-tile (tile_rows, 1) weight column.
    out_ref[...] = spec_ref[...] * w_ref[...]


def _make_scale_kernel_resident(tile_rows):
    # w_ref holds the whole (rows_padded, 1) weight column (DMA'd once,
    # since its block index is constant across grid steps); slice per step.
    def kernel(spec_ref, w_ref, out_ref):
        r0 = pl.multiple_of(pl.program_id(0) * tile_rows, 8)
        out_ref[...] = spec_ref[...] * w_ref[pl.ds(r0, tile_rows), :]
    return kernel


def _round_up(x, m):
    return ((x + m - 1) // m) * m


def _choose_tile_rows(rows, row_bytes, target_bytes=4 << 20):
    """Fixed row tile: multiple of 8, ~target_bytes per block, and >= 2 grid
    steps whenever rows >= 16 (so the parallel grid axis can use both v7x
    TensorCores).  The ragged last block is handled by Pallas."""
    if rows <= 8:
        return rows                                      # one tiny block
    by_bytes = max(8, (target_bytes // max(row_bytes, 1)) // 8 * 8)
    by_split = _round_up(pl.cdiv(rows, 2), 8)            # guarantees >= 2 steps
    return max(8, min(by_bytes, by_split))


def _vmem_limit_bytes():
    """min(64 MiB, 3/4 of physical VMEM): 64 MiB on v5e/v6e, 48 MiB on v7x."""
    try:
        cap = int(pltpu.get_tpu_info().vmem_capacity_bytes)
    except Exception:  # pragma: no cover - conservative fallback
        cap = 64 << 20
    return min(64 << 20, (cap * 3) // 4)


def spectral_attention(x, w1, b1, w2, b2):
    b, c, h, w = x.shape
    hw = h * w
    w_spec = w // 2 + 1                  # rfft half-spectrum width
    rows = b * c
    lanes = 2 * h * w_spec               # interleaved (re, im) per (b, c) row

    # ---- real FFT (glue; no Pallas FFT primitive) ---------------------------
    # TODO(synk): rfft2/irfft2 stay in plain JAX (XLA FFT); no Pallas FFT.
    x_fft = jnp.fft.rfft2(x)             # (b, c, h, w_spec) complex64

    # ---- squeeze-excite MLP in plain XLA (per perf review: <1% MXU util, ----
    # ---- not worth a custom-call launch).  Pool straight from the DC bin. ---
    pooled = (jnp.real(x_fft[:, :, 0, 0]) * (1.0 / hw)).astype(jnp.float32)
    h1 = jnp.maximum(pooled @ w1 + b1, 0.0)              # fc1 + ReLU
    att = jax.nn.sigmoid(h1 @ w2 + b2)                   # fc2 + sigmoid, (b, c)
    w_rows = att.reshape(rows, 1)                        # row order == spectrum

    # ---- single interleaved float32 view of the spectrum --------------------
    spec_f32 = x_fft.reshape(rows, h * w_spec).view(jnp.float32)  # (rows, lanes)

    # ---- tiling --------------------------------------------------------------
    # TODO(synk): for extreme h*w (one row >> ~1.5 MiB) a lane-axis grid dim
    # would be needed; unnecessary at these sizes.
    tile_rows = _choose_tile_rows(rows, lanes * 4)
    num_tiles = pl.cdiv(rows, tile_rows)
    grid = (num_tiles,)
    rows_padded = num_tiles * tile_rows

    # Hold the whole weight column resident in VMEM when it is small
    # (it pads to (rows_padded, 128) f32 in VMEM); otherwise per-tile blocks.
    resident = rows_padded * 128 * 4 <= (2 << 20)
    if resident:
        pad = rows_padded - rows
        w_in = jnp.pad(w_rows, ((0, pad), (0, 0))) if pad else w_rows
        w_block = pl.BlockSpec((rows_padded, 1), lambda i: (0, 0))
        kernel = _make_scale_kernel_resident(tile_rows)
    else:
        w_in = w_rows
        w_block = pl.BlockSpec((tile_rows, 1), lambda i: (i, 0))
        kernel = _scale_kernel_tiled

    scaled = pl.pallas_call(
        kernel,
        out_shape=jax.ShapeDtypeStruct((rows, lanes), jnp.float32),
        grid=grid,
        in_specs=[pl.BlockSpec((tile_rows, lanes), lambda i: (i, 0)),
                  w_block],
        out_specs=pl.BlockSpec((tile_rows, lanes), lambda i: (i, 0)),
        input_output_aliases={0: 0},     # re-weight the spectrum in place
        compiler_params=pltpu.CompilerParams(
            dimension_semantics=("parallel",),
            vmem_limit_bytes=_vmem_limit_bytes()),
    )(spec_f32, w_in)

    # ---- back to complex, inverse real FFT -----------------------------------
    spec_scaled = scaled.view(jnp.complex64).reshape(b, c, h, w_spec)
    return jnp.fft.irfft2(spec_scaled, s=(h, w)).astype(jnp.float32)


# ---------------------------------------------------------------------------
# Pure-JAX reference (mirrors the PyTorch forward) for verification
# ---------------------------------------------------------------------------
def reference(x, w1, b1, w2, b2):
    b, c, h, w = x.shape
    y = jnp.mean(x, axis=(2, 3))                     # avgpool -> (b, c)
    y = jnp.maximum(y @ w1 + b1[0], 0.0)             # fc1 + relu
    y = y @ w2 + b2[0]                               # fc2
    aw = jax.nn.sigmoid(y).reshape(b, c, 1, 1)
    x_fft = jnp.fft.fft2(x)
    return jnp.real(jnp.fft.ifft2(x_fft * aw)).astype(jnp.float32)


if __name__ == "__main__":
    key = jax.random.PRNGKey(0)
    k_x, k_w1, k_b1, k_w2, k_b2 = jax.random.split(key, 5)

    # in_channels must be >= 16 so that c // 16 >= 1 (as in the module)
    b, c, h, w = 2, 64, 16, 16
    r = c // 16

    x = jax.random.normal(k_x, (b, c, h, w), dtype=jnp.float32)

    # fc1: Linear(c, r) -> torch weight (r, c); we store the transpose (c, r)
    # fc2: Linear(r, c) -> torch weight (c, r); we store the transpose (r, c)
    w1 = 0.1 * jax.random.normal(k_w1, (c, r), dtype=jnp.float32)
    b1 = 0.1 * jax.random.normal(k_b1, (1, r), dtype=jnp.float32)
    w2 = 0.1 * jax.random.normal(k_w2, (r, c), dtype=jnp.float32)
    b2 = 0.1 * jax.random.normal(k_b2, (1, c), dtype=jnp.float32)

    fn = jax.jit(spectral_attention)
    out = jax.block_until_ready(fn(x, w1, b1, w2, b2))
    ref = jax.block_until_ready(reference(x, w1, b1, w2, b2))

    assert out.shape == (b, c, h, w)
    assert jnp.allclose(out, ref, atol=5e-4, rtol=5e-4), \
        float(jnp.max(jnp.abs(out - ref)))

    print("KERNEL_OK")
</pallas_src>

<mosaic_0001>
module attributes {stable_mosaic.version = 11 : i64} {
  func.func @kernel(%arg0: i32, %arg1: memref<64x288xf32, #tpu.memory_space<vmem>>, %arg2: memref<128x1xf32, #tpu.memory_space<vmem>>, %arg3: memref<64x288xf32, #tpu.memory_space<vmem>>) attributes {dimension_semantics = [#tpu.dimension_semantics<parallel>], iteration_bounds = array<i64: 2>, scalar_prefetch = 0 : i64, scratch_operands = 0 : i64, tpu.core_type = #tpu.core_type<tc>, window_params = [{transform_indices = @transform_0, window_bounds = array<i64: 64, 288>}, {pipeline_mode = #tpu.pipeline_mode<synchronous>, transform_indices = @transform_1, window_bounds = array<i64: 128, 1>}, {transform_indices = @transform_2, window_bounds = array<i64: 64, 288>}]} {
    %c64_i32 = arith.constant 64 : i32
    %0 = arith.muli %arg0, %c64_i32 : i32
    %1 = tpu.assume_multiple %0, 8 : i32
    %c0 = arith.constant 0 : index
    %c0_0 = arith.constant 0 : index
    %2 = vector.load %arg1[%c0, %c0_0] : memref<64x288xf32, #tpu.memory_space<vmem>>, vector<64x288xf32>
    %3 = arith.index_cast %1 : i32 to index
    %c0_1 = arith.constant 0 : index
    %4 = vector.load %arg2[%3, %c0_1] : memref<128x1xf32, #tpu.memory_space<vmem>>, vector<64x1xf32>
    %5 = vector.broadcast %4 : vector<64x1xf32> to vector<64x288xf32>
    %6 = arith.mulf %2, %5 : vector<64x288xf32>
    %c0_2 = arith.constant 0 : index
    %c0_3 = arith.constant 0 : index
    %7 = vector.load %arg3[%c0_2, %c0_3] : memref<64x288xf32, #tpu.memory_space<vmem>>, vector<64x288xf32>
    tpu.vector_store %arg3[%c0_2, %c0_3], %6 {strides = array<i32>} : memref<64x288xf32, #tpu.memory_space<vmem>>, vector<64x288xf32>,
    return
  }
  func.func @transform_0(%arg0: i32) -> (i32, i32) {
    %c0_i32 = arith.constant 0 : i32
    %c0_i32_0 = arith.constant 0 : i32
    return %arg0, %c0_i32 : i32, i32
  }
  func.func @transform_1(%arg0: i32) -> (i32, i32) {
    %c0_i32 = arith.constant 0 : i32
    %c0_i32_0 = arith.constant 0 : i32
    %c0_i32_1 = arith.constant 0 : i32
    return %c0_i32, %c0_i32_0 : i32, i32
  }
  func.func @transform_2(%arg0: i32) -> (i32, i32) {
    %c0_i32 = arith.constant 0 : i32
    %c0_i32_0 = arith.constant 0 : i32
    return %arg0, %c0_i32 : i32, i32
  }
}

</mosaic_0001>

<bundles_post_ra>
// kernel: spectral_attention.1
= control target key start
LH: loop header
LB: loop body
LE: loop exit
PB: predicated region body
PF: predicated region fallthrough
CT: control target
= control target key end

     0   :  { %s383_s9 = smov 0   ;;  %s437_s0 = inlined_call_operand.vmem [shape: f32[128,288], index: 0, kind: input, shape index: {}, may-alias: {0,2}]   ;;  %s438_s1 = inlined_call_operand.vmem [shape: f32[128,1], index: 1, kind: input, shape index: {}]   ;;  %s439_s2 = inlined_call_operand.vmem [shape: f32[128,288], index: 2, kind: output, shape index: {}, may-alias: {0,2}]  }
   0x1 LB: > { %s335_s10 = sadd.s32 4294967295, %s365_s9   ;;  %p339_p0 = scmp.ge.s32.totalorder %s365_s9, 1  ;;  %s365_s9 = sphi %s383_s9, %s12_s9  }
   0x2   : > { %p114_p1 = scmp.lt.s32.totalorder %s365_s9, 3 }
   0x4   : > { %p115_p2 = pnand %p339_p0, %p114_p1 }
   0x5   : > { %s344_s11 = sshll.u32 (!%p115_p2), %s335_s10, 6  ;;  %v367_v0 = vmov (!%p115_p2), 0   ;;  %s340_s15 = sshll.u32 (!%p115_p2), %s335_s10, 3  ;;  %vm252_vm0 = vcmask (!%p115_p2), 261120  }
   0x6   : > { %118 = sbr.rel (%p115_p2) target bundleno = 153 (0x99), region = 28  ;;  %358 = vset.pattern.permute.xlu1 (!%p115_p2), %v367_v0  ;;  %357 = vset.pattern.permute.xlu0 (!%p115_p2), %v367_v0  ;;  %s177_s14 = scalar_lea.vmem (!%p115_p2), %s438_s1, %s344_s11 }
   0x7   : > { %v180_v1 = vld [vmem:[%s177_s14 + $0x10] sm:$0xff] (!%p115_p2)  ;;  %v178_v2 = vld [vmem:[%s177_s14] sm:$0xff] (!%p115_p2)  ;;  %v181_v3 = vld [vmem:[%s177_s14 + $0x18] sm:$0xff] (!%p115_p2)  ;;  %p139_p3 = scmp.lt.s32.totalorder (!%p115_p2), %s340_s15, 15 }
   0x8   : > { %198 = vperm.xlu1 (!%p115_p2), %358, %v180_v1   ;;  %188 = vperm.xlu0 (!%p115_p2), %357, %v178_v2   ;;  %v179_v4 = vld [vmem:[%s177_s14 + $0x8] sm:$0xff] (!%p115_p2)  ;;  %v182_v6 = vld [vmem:[%s177_s14 + $0x20] sm:$0xff] (!%p115_p2)  ;;  %v185_v7 = vld [vmem:[%s177_s14 + $0x38] sm:$0xff] (!%p115_p2) }
   0x9   : > { %v183_v5 = vld [vmem:[%s177_s14 + $0x28] sm:$0xff] (!%p115_p2)  ;;  %v184_v8 = vld [vmem:[%s177_s14 + $0x30] sm:$0xff] (!%p115_p2) }
   0xc   : > { %203 = vperm.xlu1 (!%p115_p2), %358, %v181_v3   ;;  %193 = vperm.xlu0 (!%p115_p2), %357, %v179_v4  }
   0xd   : > { %s441_s15 = smov (!%p139_p3, %s340_s15), 15 }
   0xe   : > { %s347_s16 = smul.u32 24, %s441_s15 }
  0x10   : > { %213 = vperm.xlu1 %358, %v183_v5   ;;  %208 = vperm.xlu0 %357, %v182_v6   ;;  %s143_s19 = scalar_lea.vmem %s437_s0, %s347_s16  ;;  %s400_s22 = scalar_lea.vmem %s439_s2, %s347_s16 }
  0x11   : > { %v159_v9 = vld [vmem:[%s143_s19 + $0x30] sm:$0xff]  ;;  %v160_v10 = vld [vmem:[%s143_s19 + $0x38] sm:$0xff]  ;;  %v161_v11 = vld [vmem:[%s143_s19 + $0x40] sm:$0xff] }
  0x12   : > { %v153_v12 = vld [vmem:[%s143_s19] sm:$0xff]  ;;  %v154_v13 = vld [vmem:[%s143_s19 + $0x8] sm:$0xff]  ;;  %v155_v14 = vld [vmem:[%s143_s19 + $0x10] sm:$0xff] }
  0x13   : > { %v162_v15 = vld [vmem:[%s143_s19 + $0x48] sm:$0xff]  ;;  %v163_v16 = vld [vmem:[%s143_s19 + $0x50] sm:$0xff]  ;;  %v164_v17 = vld [vmem:[%s143_s19 + $0x58] sm:$0xff] }
  0x14   : > { %223 = vperm.xlu1 %358, %v185_v7   ;;  %218 = vperm.xlu0 %357, %v184_v8   ;;  %v156_v18 = vld [vmem:[%s143_s19 + $0x18] sm:$0xff]  ;;  %v157_v19 = vld [vmem:[%s143_s19 + $0x20] sm:$0xff]  ;;  %v158_v20 = vld [vmem:[%s143_s19 + $0x28] sm:$0xff] }
  0x15   : > { %v168_v21 = vld [vmem:[%s143_s19 + $0x78] sm:$0xff]  ;;  %v169_v22 = vld [vmem:[%s143_s19 + $0x80] sm:$0xff]  ;;  %v170_v23 = vld [vmem:[%s143_s19 + $0x88] sm:$0xff] }
  0x16   : > { %v165_v24 = vld [vmem:[%s143_s19 + $0x60] sm:$0xff]  ;;  %v166_v25 = vld [vmem:[%s143_s19 + $0x68] sm:$0xff]  ;;  %v167_v26 = vld [vmem:[%s143_s19 + $0x70] sm:$0xff] }
  0x17   : > { %v174_v27 = vld [vmem:[%s143_s19 + $0xa8] sm:$0xff]  ;;  %v175_v28 = vld [vmem:[%s143_s19 + $0xb0] sm:$0xff]  ;;  %v176_v29 = vld [vmem:[%s143_s19 + $0xb8] sm:$0xff] }
  0x18   : > { %v171_v32 = vld [vmem:[%s143_s19 + $0x90] sm:$0xff]  ;;  %v172_v33 = vld [vmem:[%s143_s19 + $0x98] sm:$0xff]  ;;  %v173_v34 = vld [vmem:[%s143_s19 + $0xa0] sm:$0xff] }
  0x87   : > { %v199_v30 = vpop.permute.xlu1 %198  ;;  %v189_v31 = vpop.permute.xlu0 %188 }
  0x88   : > { %v232_v35 = vmul.f32 %v199_v30, %v159_v9  ;;  %v233_v36 = vmul.f32 %v199_v30, %v160_v10  ;;  %v234_v37 = vmul.f32 %v199_v30, %v161_v11  ;;  %v226_v38 = vmul.f32 %v189_v31, %v153_v12 }
  0x89   : > { %v227_v39 = vmul.f32 %v189_v31, %v154_v13  ;;  %v228_v40 = vmul.f32 %v189_v31, %v155_v14 }
  0x8a   : > { %250 = vst [vmem:[%s400_s22] sm:$0xff] %v226_v38  ;;  %257 = vst [vmem:[%s400_s22 + $0x30] sm:$0xff] %v232_v35 }
  0x8b   : > { %258 = vst [vmem:[%s400_s22 + $0x38] sm:$0xff] %v233_v36  ;;  %259 = vst.msk [vmem:[%s400_s22 + $0x40] sm:$0xff] %vm252_vm0, %v234_v37  ;;  %v204_v41 = vpop.permute.xlu1 %203  ;;  %v194_v42 = vpop.permute.xlu0 %193 }
  0x8c   : > { %251 = vst [vmem:[%s400_s22 + $0x8] sm:$0xff] %v227_v39  ;;  %253 = vst.msk [vmem:[%s400_s22 + $0x10] sm:$0xff] %vm252_vm0, %v228_v40  ;;  %v235_v43 = vmul.f32 %v204_v41, %v162_v15  ;;  %v236_v44 = vmul.f32 %v204_v41, %v163_v16  ;;  %v237_v45 = vmul.f32 %v204_v41, %v164_v17 }
  0x8d   : > { %v229_v46 = vmul.f32 %v194_v42, %v156_v18  ;;  %v230_v47 = vmul.f32 %v194_v42, %v157_v19  ;;  %v231_v48 = vmul.f32 %v194_v42, %v158_v20 }
  0x8e   : > { %260 = vst [vmem:[%s400_s22 + $0x48] sm:$0xff] %v235_v43  ;;  %261 = vst [vmem:[%s400_s22 + $0x50] sm:$0xff] %v236_v44 }
  0x8f   : > { %254 = vst [vmem:[%s400_s22 + $0x18] sm:$0xff] %v229_v46  ;;  %262 = vst.msk [vmem:[%s400_s22 + $0x58] sm:$0xff] %vm252_vm0, %v237_v45  ;;  %v214_v49 = vpop.permute.xlu1 %213  ;;  %v209_v50 = vpop.permute.xlu0 %208 }
  0x90   : > { %255 = vst [vmem:[%s400_s22 + $0x20] sm:$0xff] %v230_v47  ;;  %256 = vst.msk [vmem:[%s400_s22 + $0x28] sm:$0xff] %vm252_vm0, %v231_v48  ;;  %v241_v51 = vmul.f32 %v214_v49, %v168_v21  ;;  %v242_v52 = vmul.f32 %v214_v49, %v169_v22  ;;  %v243_v53 = vmul.f32 %v214_v49, %v170_v23 }
  0x91   : > { %v238_v54 = vmul.f32 %v209_v50, %v165_v24  ;;  %v239_v55 = vmul.f32 %v209_v50, %v166_v25  ;;  %v240_v56 = vmul.f32 %v209_v50, %v167_v26 }
  0x92   : > { %266 = vst [vmem:[%s400_s22 + $0x78] sm:$0xff] %v241_v51  ;;  %267 = vst [vmem:[%s400_s22 + $0x80] sm:$0xff] %v242_v52 }
  0x93   : > { %263 = vst [vmem:[%s400_s22 + $0x60] sm:$0xff] %v238_v54  ;;  %268 = vst.msk [vmem:[%s400_s22 + $0x88] sm:$0xff] %vm252_vm0, %v243_v53  ;;  %v224_v57 = vpop.permute.xlu1 %223  ;;  %v219_v58 = vpop.permute.xlu0 %218 }
  0x94   : > { %264 = vst [vmem:[%s400_s22 + $0x68] sm:$0xff] %v239_v55  ;;  %265 = vst.msk [vmem:[%s400_s22 + $0x70] sm:$0xff] %vm252_vm0, %v240_v56  ;;  %v247_v59 = vmul.f32 %v224_v57, %v174_v27  ;;  %v248_v60 = vmul.f32 %v224_v57, %v175_v28  ;;  %v249_v61 = vmul.f32 %v224_v57, %v176_v29 }
  0x95   : > { %v244_v62 = vmul.f32 %v219_v58, %v171_v32  ;;  %v245_v63 = vmul.f32 %v219_v58, %v172_v33  ;;  %v246_v0 = vmul.f32 %v219_v58, %v173_v34 }
  0x96   : > { %272 = vst [vmem:[%s400_s22 + $0xa8] sm:$0xff] %v247_v59  ;;  %273 = vst [vmem:[%s400_s22 + $0xb0] sm:$0xff] %v248_v60 }
  0x97   : > { %269 = vst [vmem:[%s400_s22 + $0x90] sm:$0xff] %v244_v62  ;;  %274 = vst.msk [vmem:[%s400_s22 + $0xb8] sm:$0xff] %vm252_vm0, %v249_v61 }
  0x98   : > { %270 = vst [vmem:[%s400_s22 + $0x98] sm:$0xff] %v245_v63  ;;  %271 = vst.msk [vmem:[%s400_s22 + $0xa0] sm:$0xff] %vm252_vm0, %v246_v0 }
  0x99 PF: > { %s12_s9 = sadd.s32 1, %s365_s9  }
  0x9a   : > { %p9_p4 = scmp.ge.s32.totalorder %s12_s9, 4  }
  0x9c   :  { %11 = sbr.rel (!%p9_p4) target bundleno = 1 (0x1), region = 59 }

// kernel: reverse.1
= control target key start
LH: loop header
LB: loop body
LE: loop exit
PB: predicated region body
PF: predicated region fallthrough
CT: control target
= control target key end

     0   :  { %s344_s0 = inlined_call_operand.vmem [shape: f32[2,64,16,7], index: 0, kind: input, shape index: {}]   ;;  %s345_s1 = inlined_call_operand.vmem [shape: f32[2,64,16,7], index: 1, kind: output, shape index: {}]  }
   0x1   :  { %v112_v0 = vld [vmem:[%s344_s0 + $0x60] sm:$0xff]  ;;  %v113_v1 = vld [vmem:[%s344_s0 + $0xd0] sm:$0xff]  ;;  %v138_v14 = vld [vmem:[%s344_s0 + $0x68] sm:$0xff] }
   0x2   :  { %v115_v2 = vld [vmem:[%s344_s0 + $0x50] sm:$0xff]  ;;  %4 = vst [vmem:[%s345_s1] sm:$0xff] %v112_v0  ;;  %114 = vst [vmem:[%s345_s1 + $0x70] sm:$0xff] %v113_v1  ;;  %v117_v3 = vld [vmem:[%s344_s0 + $0xc0] sm:$0xff] }
   0x3   :  { %116 = vst [vmem:[%s345_s1 + $0x10] sm:$0xff] %v115_v2  ;;  %v119_v4 = vld [vmem:[%s344_s0 + $0x40] sm:$0xff]  ;;  %v121_v5 = vld [vmem:[%s344_s0 + $0xb0] sm:$0xff]  ;;  %118 = vst [vmem:[%s345_s1 + $0x80] sm:$0xff] %v117_v3 }
   0x4   :  { %120 = vst [vmem:[%s345_s1 + $0x20] sm:$0xff] %v119_v4  ;;  %122 = vst [vmem:[%s345_s1 + $0x90] sm:$0xff] %v121_v5  ;;  %v123_v6 = vld [vmem:[%s344_s0 + $0x30] sm:$0xff]  ;;  %v125_v7 = vld [vmem:[%s344_s0 + $0xa0] sm:$0xff] }
   0x5   :  { %v127_v8 = vld [vmem:[%s344_s0 + $0x20] sm:$0xff]  ;;  %124 = vst [vmem:[%s345_s1 + $0x30] sm:$0xff] %v123_v6  ;;  %126 = vst [vmem:[%s345_s1 + $0xa0] sm:$0xff] %v125_v7  ;;  %v129_v9 = vld [vmem:[%s344_s0 + $0x90] sm:$0xff] }
   0x6   :  { %128 = vst [vmem:[%s345_s1 + $0x40] sm:$0xff] %v127_v8  ;;  %v131_v10 = vld [vmem:[%s344_s0 + $0x10] sm:$0xff]  ;;  %v133_v11 = vld [vmem:[%s344_s0 + $0x80] sm:$0xff]  ;;  %130 = vst [vmem:[%s345_s1 + $0xb0] sm:$0xff] %v129_v9 }
   0x7   :  { %132 = vst [vmem:[%s345_s1 + $0x50] sm:$0xff] %v131_v10  ;;  %134 = vst [vmem:[%s345_s1 + $0xc0] sm:$0xff] %v133_v11  ;;  %v49_v12 = vld [vmem:[%s344_s0] sm:$0xff]  ;;  %v136_v13 = vld [vmem:[%s344_s0 + $0x70] sm:$0xff] }
   0x8   :  { %135 = vst [vmem:[%s345_s1 + $0x60] sm:$0xff] %v49_v12  ;;  %137 = vst [vmem:[%s345_s1 + $0xd0] sm:$0xff] %v136_v13  ;;  %v140_v15 = vld [vmem:[%s344_s0 + $0xd8] sm:$0xff]  ;;  %v144_v17 = vld [vmem:[%s344_s0 + $0xc8] sm:$0xff] }
   0x9   :  { %139 = vst [vmem:[%s345_s1 + $0x8] sm:$0xff] %v138_v14  ;;  %v142_v16 = vld [vmem:[%s344_s0 + $0x58] sm:$0xff]  ;;  %141 = vst [vmem:[%s345_s1 + $0x78] sm:$0xff] %v140_v15  ;;  %v146_v18 = vld [vmem:[%s344_s0 + $0x48] sm:$0xff] }
   0xa   :  { %143 = vst [vmem:[%s345_s1 + $0x18] sm:$0xff] %v142_v16  ;;  %145 = vst [vmem:[%s345_s1 + $0x88] sm:$0xff] %v144_v17  ;;  %v148_v19 = vld [vmem:[%s344_s0 + $0xb8] sm:$0xff]  ;;  %v152_v21 = vld [vmem:[%s344_s0 + $0xa8] sm:$0xff] }
   0xb   :  { %v150_v20 = vld [vmem:[%s344_s0 + $0x38] sm:$0xff]  ;;  %147 = vst [vmem:[%s345_s1 + $0x28] sm:$0xff] %v146_v18  ;;  %149 = vst [vmem:[%s345_s1 + $0x98] sm:$0xff] %v148_v19  ;;  %v154_v22 = vld [vmem:[%s344_s0 + $0x28] sm:$0xff] }
   0xc   :  { %151 = vst [vmem:[%s345_s1 + $0x38] sm:$0xff] %v150_v20  ;;  %v156_v23 = vld [vmem:[%s344_s0 + $0x98] sm:$0xff]  ;;  %153 = vst [vmem:[%s345_s1 + $0xa8] sm:$0xff] %v152_v21  ;;  %v160_v25 = vld [vmem:[%s344_s0 + $0x88] sm:$0xff] }
   0xd   :  { %155 = vst [vmem:[%s345_s1 + $0x48] sm:$0xff] %v154_v22  ;;  %157 = vst [vmem:[%s345_s1 + $0xb8] sm:$0xff] %v156_v23  ;;  %v158_v24 = vld [vmem:[%s344_s0 + $0x18] sm:$0xff]  ;;  %v162_v26 = vld [vmem:[%s344_s0 + $0x8] sm:$0xff] }
   0xe   :  { %159 = vst [vmem:[%s345_s1 + $0x58] sm:$0xff] %v158_v24  ;;  %161 = vst [vmem:[%s345_s1 + $0xc8] sm:$0xff] %v160_v25  ;;  %v164_v27 = vld [vmem:[%s344_s0 + $0x78] sm:$0xff] }
   0xf   :  { %163 = vst [vmem:[%s345_s1 + $0x68] sm:$0xff] %v162_v26  ;;  %165 = vst [vmem:[%s345_s1 + $0xd8] sm:$0xff] %v164_v27 }

</bundles_post_ra>
